<compile_context>
chip_gen: v7x
topology: tpu7x:2x2x1
jax: 0.10.0
libtpu: 0.0.40
codegen_flags: <defaults>
</compile_context>

<pallas_src>
import functools

import jax
import jax.numpy as jnp
from jax import lax
from jax.experimental import pallas as pl
from jax.experimental.pallas import tpu as pltpu

_EPS = 1e-5
_VMEM_LIMIT = 32 * 1024 * 1024


def _const_spec(w):
    # full-array block, constant (0,...,0) block index regardless of grid pos
    nd = w.ndim
    return pl.BlockSpec(w.shape, lambda *_: (0,) * nd)


# --------------------------------------------------------------------------
# Pass 0: K/V projection of the source descriptors (once per batch element).
# --------------------------------------------------------------------------
def _kv_proj_kernel(src_ref, wkT_ref, bk_ref, wvT_ref, bv_ref, k_ref, v_ref):
    f32, bf16 = jnp.float32, jnp.bfloat16
    s = src_ref[0].astype(bf16)                                   # (M, F)
    k = jnp.dot(s, wkT_ref[...], preferred_element_type=f32) + bk_ref[...]
    v = jnp.dot(s, wvT_ref[...], preferred_element_type=f32) + bv_ref[...]
    k_ref[0] = k.astype(bf16)
    v_ref[0] = v.astype(bf16)


# --------------------------------------------------------------------------
# Pass 1: per-query-tile attention + merge + first MLP conv (pre-norm h1).
# --------------------------------------------------------------------------
def _attn_h1_kernel(x_ref, k_ref, v_ref,
                    wqT_ref, bq_ref, wmT_ref, bm_ref,
                    w1xT_ref, w1mT_ref, b1_ref,
                    h1_ref, *, num_heads, head_dim):
    f32, bf16 = jnp.float32, jnp.bfloat16
    x = x_ref[0]                                                  # (TN, F) f32
    xb = x.astype(bf16)
    k = k_ref[0]                                                  # (M, F) bf16
    v = v_ref[0]                                                  # (M, F) bf16

    # softmax scale is already folded into wqT / bq at parameter prep time.
    q = jnp.dot(xb, wqT_ref[...], preferred_element_type=f32) + bq_ref[...]
    qb = q.astype(bf16)

    # merge projection folded into the head loop: msg += (p @ v_h) @ Wm_h.
    msg = jnp.zeros(x.shape, f32)                                 # (TN, F)
    for h in range(num_heads):                                    # static unroll
        sl = slice(h * head_dim, (h + 1) * head_dim)
        s = lax.dot_general(qb[:, sl], k[:, sl], (((1,), (1,)), ((), ())),
                            preferred_element_type=f32)           # (TN, M) f32
        s = s - jnp.max(s, axis=-1, keepdims=True)
        e = jnp.exp(s)
        inv = pl.reciprocal(jnp.sum(e, axis=-1, keepdims=True), approx=True)
        p = (e * inv).astype(bf16)                                # (TN, M)
        o = jnp.dot(p, v[:, sl], preferred_element_type=f32)      # (TN, Dh)
        msg = msg + jnp.dot(o.astype(bf16), wmT_ref[sl, :],
                            preferred_element_type=f32)           # (TN, F)
    msg = msg + bm_ref[...]

    # first MLP conv without materializing concat([x, message]):
    # h1 = x @ W1[:, :F].T + message @ W1[:, F:].T + b1
    h1 = (jnp.dot(xb, w1xT_ref[...], preferred_element_type=f32)
          + jnp.dot(msg.astype(bf16), w1mT_ref[...], preferred_element_type=f32)
          + b1_ref[...])
    h1_ref[0] = h1.astype(h1_ref.dtype)                           # (TN, 2F) bf16


# --------------------------------------------------------------------------
# Pass 2: InstanceNorm (precomputed stats) + ReLU + second conv + residual.
# --------------------------------------------------------------------------
def _norm_mlp2_kernel(x_ref, h1_ref, mu_ref, inv_ref, w2T_ref, b2_ref, out_ref):
    f32, bf16 = jnp.float32, jnp.bfloat16
    hn = (h1_ref[0].astype(f32) - mu_ref[0]) * inv_ref[0]         # (TN, 2F) f32
    hn = jnp.maximum(hn, 0.0)
    delta = jnp.dot(hn.astype(bf16), w2T_ref[...],
                    preferred_element_type=f32) + b2_ref[...]
    out_ref[0] = x_ref[0] + delta


# --------------------------------------------------------------------------
# One AttentionalPropagation step: out = x + MLP(cat(x, MHA(x, src, src)))
# --------------------------------------------------------------------------
def attn_prop_pallas(x, src, params, num_heads=4, tile_n=128):
    """x: (B, N, F) f32, src: (B, M, F) f32 (NWC)."""
    B, N, F = x.shape
    M = src.shape[1]
    head_dim = F // num_heads

    def pick_tile(n):
        # multiple of 16 (bf16 sublane packing of the h1 intermediate) or full.
        ok = (tile_n < n) and (n % tile_n == 0) and (tile_n % 16 == 0)
        return tile_n if ok else n

    tn = pick_tile(N)
    nt = N // tn

    cp1 = pltpu.CompilerParams(dimension_semantics=("parallel",),
                               vmem_limit_bytes=_VMEM_LIMIT)
    cp2 = pltpu.CompilerParams(dimension_semantics=("parallel", "parallel"),
                               vmem_limit_bytes=_VMEM_LIMIT)

    # ---- Pass 0: K/V projection (bf16 outputs, head-grouped columns) ----
    kv_ws = [params['wkT'], params['bk'], params['wvT'], params['bv']]
    k_proj, v_proj = pl.pallas_call(
        _kv_proj_kernel,
        out_shape=(jax.ShapeDtypeStruct((B, M, F), jnp.bfloat16),
                   jax.ShapeDtypeStruct((B, M, F), jnp.bfloat16)),
        grid=(B,),
        in_specs=[pl.BlockSpec((1, M, F), lambda b: (b, 0, 0))]
                 + [_const_spec(w) for w in kv_ws],
        out_specs=(pl.BlockSpec((1, M, F), lambda b: (b, 0, 0)),
                   pl.BlockSpec((1, M, F), lambda b: (b, 0, 0))),
        compiler_params=cp1,
    )(src, *kv_ws)

    # ---- Pass 1: attention + merge + first MLP conv, query-tiled ----
    a_ws = [params['wqT'], params['bq'], params['wmT'], params['bm'],
            params['w1xT'], params['w1mT'], params['b1']]
    h1 = pl.pallas_call(
        functools.partial(_attn_h1_kernel, num_heads=num_heads, head_dim=head_dim),
        out_shape=jax.ShapeDtypeStruct((B, N, 2 * F), jnp.bfloat16),
        grid=(B, nt),
        in_specs=[pl.BlockSpec((1, tn, F), lambda b, t: (b, t, 0)),
                  pl.BlockSpec((1, M, F), lambda b, t: (b, 0, 0)),
                  pl.BlockSpec((1, M, F), lambda b, t: (b, 0, 0))]
                 + [_const_spec(w) for w in a_ws],
        out_specs=pl.BlockSpec((1, tn, 2 * F), lambda b, t: (b, t, 0)),
        compiler_params=cp2,
    )(x, k_proj, v_proj, *a_ws)

    # InstanceNorm statistics over the full point axis.  This tiny (B,1,2F)
    # reduction crosses query tiles, so it is done in XLA between the passes
    # (single fused sweep over h1; both moments computed in f32).
    h1f = h1.astype(jnp.float32)
    mu = jnp.mean(h1f, axis=1, keepdims=True)
    var = jnp.mean(jnp.square(h1f), axis=1, keepdims=True) - jnp.square(mu)
    inv = lax.rsqrt(jnp.maximum(var, 0.0) + _EPS)

    # ---- Pass 2: normalize + ReLU + second conv + residual, query-tiled ----
    m_ws = [params['w2T'], params['b2']]
    out = pl.pallas_call(
        _norm_mlp2_kernel,
        out_shape=jax.ShapeDtypeStruct((B, N, F), jnp.float32),
        grid=(B, nt),
        in_specs=[pl.BlockSpec((1, tn, F), lambda b, t: (b, t, 0)),
                  pl.BlockSpec((1, tn, 2 * F), lambda b, t: (b, t, 0)),
                  pl.BlockSpec((1, 1, 2 * F), lambda b, t: (b, 0, 0)),
                  pl.BlockSpec((1, 1, 2 * F), lambda b, t: (b, 0, 0))]
                 + [_const_spec(w) for w in m_ws],
        out_specs=pl.BlockSpec((1, tn, F), lambda b, t: (b, t, 0)),
        compiler_params=cp2,
    )(x, h1, mu, inv, *m_ws)
    return out


# --------------------------------------------------------------------------
# Parameter construction (deterministic, synthetic weights)
# --------------------------------------------------------------------------
def make_layer_params(key, F, num_heads=4):
    Dh = F // num_heads
    ks = jax.random.split(key, 12)

    def w(k, o, i):
        return jax.random.normal(k, (o, i), jnp.float32) * 0.1

    def b(k, o):
        return jax.random.normal(k, (o,), jnp.float32) * 0.05

    raw = dict(
        wq=w(ks[0], F, F), bq=b(ks[1], F),
        wk=w(ks[2], F, F), bk=b(ks[3], F),
        wv=w(ks[4], F, F), bv=b(ks[5], F),
        wm=w(ks[6], F, F), bm=b(ks[7], F),
        w1=w(ks[8], 2 * F, 2 * F), b1=b(ks[9], 2 * F),
        w2=w(ks[10], F, 2 * F), b2=jnp.zeros((F,), jnp.float32),  # mlp[-1].bias = 0
    )

    # permutation: kernel column h*Dh + d  <-  original channel d*H + h
    perm = jnp.array([d * num_heads + h for h in range(num_heads) for d in range(Dh)],
                     dtype=jnp.int32)
    bf16 = jnp.bfloat16
    scale = 1.0 / (Dh ** 0.5)                 # softmax scale folded into Wq, bq
    w1T = raw['w1'].T                         # (2F_in, 2F_out)

    kernel_ready = dict(
        wqT=(raw['wq'][perm, :].T * scale).astype(bf16),
        bq=(raw['bq'][perm] * scale).reshape(1, F),
        wkT=raw['wk'][perm, :].T.astype(bf16), bk=raw['bk'][perm].reshape(1, F),
        wvT=raw['wv'][perm, :].T.astype(bf16), bv=raw['bv'][perm].reshape(1, F),
        wmT=raw['wm'][:, perm].T.astype(bf16), bm=raw['bm'].reshape(1, F),
        w1xT=w1T[:F, :].astype(bf16),          # rows for the x half of concat
        w1mT=w1T[F:, :].astype(bf16),          # rows for the message half
        b1=raw['b1'].reshape(1, 2 * F),
        w2T=raw['w2'].T.astype(bf16), b2=raw['b2'].reshape(1, F),
    )
    return raw, kernel_ready


# --------------------------------------------------------------------------
# AttentionalGNN forward (glue loop in plain JAX, hot path in Pallas)
# --------------------------------------------------------------------------
def attentional_gnn(desc0, desc1, layer_params, layer_names, num_heads=4, tile_n=128):
    """desc0: (B, N0, F), desc1: (B, N1, F) — NWC layout."""
    for params, name in zip(layer_params, layer_names):
        if name == 'cross':
            src0, src1 = desc1, desc0
        else:
            src0, src1 = desc0, desc1
        new0 = attn_prop_pallas(desc0, src0, params, num_heads, tile_n)
        new1 = attn_prop_pallas(desc1, src1, params, num_heads, tile_n)
        desc0, desc1 = new0, new1
    return desc0, desc1


# --------------------------------------------------------------------------
# Pure-JAX reference mirroring the PyTorch module exactly (NCW layout, f32)
# --------------------------------------------------------------------------
def _conv1d(x, w, b):  # x (B,Cin,N), w (Cout,Cin)
    return jnp.einsum('oc,bcn->bon', w, x) + b[None, :, None]


def _ref_layer(x, src, p, F, H):
    Dh = F // H
    B = x.shape[0]
    q = _conv1d(x, p['wq'], p['bq']).reshape(B, Dh, H, -1)
    k = _conv1d(src, p['wk'], p['bk']).reshape(B, Dh, H, -1)
    v = _conv1d(src, p['wv'], p['bv']).reshape(B, Dh, H, -1)
    scores = jnp.einsum('bdhn,bdhm->bhnm', q, k) / (Dh ** 0.5)
    prob = jax.nn.softmax(scores, axis=-1)
    o = jnp.einsum('bhnm,bdhm->bdhn', prob, v).reshape(B, F, -1)
    msg = _conv1d(o, p['wm'], p['bm'])
    cat = jnp.concatenate([x, msg], axis=1)
    h1 = _conv1d(cat, p['w1'], p['b1'])
    mu = h1.mean(axis=2, keepdims=True)
    var = ((h1 - mu) ** 2).mean(axis=2, keepdims=True)
    h1 = jnp.maximum((h1 - mu) / jnp.sqrt(var + _EPS), 0.0)
    return x + _conv1d(h1, p['w2'], p['b2'])


def _ref_gnn(desc0, desc1, raw_params, layer_names, F, H):
    for p, name in zip(raw_params, layer_names):
        src0, src1 = (desc1, desc0) if name == 'cross' else (desc0, desc1)
        d0, d1 = _ref_layer(desc0, src0, p, F, H), _ref_layer(desc1, src1, p, F, H)
        desc0, desc1 = d0, d1
    return desc0, desc1


if __name__ == "__main__":
    B, F, H = 2, 32, 4
    N0, N1 = 32, 24            # N0 tiles by 16; N1 falls back to a full tile
    TILE_N = 16
    layer_names = ['self', 'cross']

    key = jax.random.PRNGKey(0)
    k0, k1, kp = jax.random.split(key, 3)
    # PyTorch-layout inputs (B, F, N)
    desc0_ncw = jax.random.normal(k0, (B, F, N0), jnp.float32)
    desc1_ncw = jax.random.normal(k1, (B, F, N1), jnp.float32)

    raw_list, kern_list = [], []
    for lk in jax.random.split(kp, len(layer_names)):
        raw, kern = make_layer_params(lk, F, H)
        raw_list.append(raw)
        kern_list.append(kern)

    # kernel layout (B, N, F)
    d0 = jnp.transpose(desc0_ncw, (0, 2, 1))
    d1 = jnp.transpose(desc1_ncw, (0, 2, 1))

    out0, out1 = attentional_gnn(d0, d1, kern_list, layer_names, H, TILE_N)
    out0 = jax.block_until_ready(out0)
    out1 = jax.block_until_ready(out1)

    # reference check against exact PyTorch semantics (f32 reference vs bf16
    # MXU operands / bf16 h1 intermediate in the kernel -> loosened tolerance)
    ref0, ref1 = _ref_gnn(desc0_ncw, desc1_ncw, raw_list, layer_names, F, H)
    ref0 = jnp.transpose(ref0, (0, 2, 1))
    ref1 = jnp.transpose(ref1, (0, 2, 1))
    assert jnp.allclose(out0, ref0, rtol=5e-2, atol=5e-2), "desc0 mismatch"
    assert jnp.allclose(out1, ref1, rtol=5e-2, atol=5e-2), "desc1 mismatch"

    print("KERNEL_OK")
</pallas_src>

<mosaic_0001>
module attributes {stable_mosaic.version = 11 : i64} {
  func.func @_kv_proj_kernel(%arg0: i32, %arg1: memref<1x32x32xf32, #tpu.memory_space<vmem>>, %arg2: memref<32x32xbf16, #tpu.memory_space<vmem>>, %arg3: memref<1x32xf32, #tpu.memory_space<vmem>>, %arg4: memref<32x32xbf16, #tpu.memory_space<vmem>>, %arg5: memref<1x32xf32, #tpu.memory_space<vmem>>, %arg6: memref<1x32x32xbf16, #tpu.memory_space<vmem>>, %arg7: memref<1x32x32xbf16, #tpu.memory_space<vmem>>) attributes {dimension_semantics = [#tpu.dimension_semantics<parallel>], iteration_bounds = array<i64: 2>, scalar_prefetch = 0 : i64, scratch_operands = 0 : i64, tpu.core_type = #tpu.core_type<tc>, window_params = [{transform_indices = @transform_0, window_bounds = array<i64: 1, 32, 32>}, {pipeline_mode = #tpu.pipeline_mode<synchronous>, transform_indices = @transform_1, window_bounds = array<i64: 32, 32>}, {pipeline_mode = #tpu.pipeline_mode<synchronous>, transform_indices = @transform_2, window_bounds = array<i64: 1, 32>}, {pipeline_mode = #tpu.pipeline_mode<synchronous>, transform_indices = @transform_3, window_bounds = array<i64: 32, 32>}, {pipeline_mode = #tpu.pipeline_mode<synchronous>, transform_indices = @transform_4, window_bounds = array<i64: 1, 32>}, {transform_indices = @transform_5, window_bounds = array<i64: 1, 32, 32>}, {transform_indices = @transform_6, window_bounds = array<i64: 1, 32, 32>}]} {
    %c0 = arith.constant 0 : index
    %c0_0 = arith.constant 0 : index
    %c0_1 = arith.constant 0 : index
    %0 = vector.load %arg1[%c0, %c0_0, %c0_1] : memref<1x32x32xf32, #tpu.memory_space<vmem>>, vector<1x32x32xf32>
    %1 = vector.shape_cast %0 : vector<1x32x32xf32> to vector<32x32xf32>
    %2 = arith.truncf %1 : vector<32x32xf32> to vector<32x32xbf16>
    %c0_2 = arith.constant 0 : index
    %c0_3 = arith.constant 0 : index
    %3 = vector.load %arg2[%c0_2, %c0_3] : memref<32x32xbf16, #tpu.memory_space<vmem>>, vector<32x32xbf16>
    %cst = arith.constant dense<0.000000e+00> : vector<32x32xf32>
    %4 = tpu.matmul %2, %3, %cst {dimension_numbers = #tpu.dot_dimension_numbers<[1], [0], [0], [1], [0, 0, 1, 1], [], []>} : vector<32x32xbf16>, vector<32x32xbf16>, vector<32x32xf32> -> vector<32x32xf32>
    %c0_4 = arith.constant 0 : index
    %c0_5 = arith.constant 0 : index
    %5 = vector.load %arg3[%c0_4, %c0_5] : memref<1x32xf32, #tpu.memory_space<vmem>>, vector<1x32xf32>
    %6 = vector.broadcast %5 : vector<1x32xf32> to vector<32x32xf32>
    %7 = arith.addf %4, %6 : vector<32x32xf32>
    %c0_6 = arith.constant 0 : index
    %c0_7 = arith.constant 0 : index
    %8 = vector.load %arg4[%c0_6, %c0_7] : memref<32x32xbf16, #tpu.memory_space<vmem>>, vector<32x32xbf16>
    %cst_8 = arith.constant dense<0.000000e+00> : vector<32x32xf32>
    %9 = tpu.matmul %2, %8, %cst_8 {dimension_numbers = #tpu.dot_dimension_numbers<[1], [0], [0], [1], [0, 0, 1, 1], [], []>} : vector<32x32xbf16>, vector<32x32xbf16>, vector<32x32xf32> -> vector<32x32xf32>
    %c0_9 = arith.constant 0 : index
    %c0_10 = arith.constant 0 : index
    %10 = vector.load %arg5[%c0_9, %c0_10] : memref<1x32xf32, #tpu.memory_space<vmem>>, vector<1x32xf32>
    %11 = vector.broadcast %10 : vector<1x32xf32> to vector<32x32xf32>
    %12 = arith.addf %9, %11 : vector<32x32xf32>
    %13 = arith.truncf %7 : vector<32x32xf32> to vector<32x32xbf16>
    %c0_11 = arith.constant 0 : index
    %c0_12 = arith.constant 0 : index
    %c0_13 = arith.constant 0 : index
    %14 = vector.load %arg6[%c0_11, %c0_12, %c0_13] : memref<1x32x32xbf16, #tpu.memory_space<vmem>>, vector<1x32x32xbf16>
    %15 = vector.shape_cast %14 : vector<1x32x32xbf16> to vector<32x32xbf16>
    %16 = vector.shape_cast %13 : vector<32x32xbf16> to vector<1x32x32xbf16>
    tpu.vector_store %arg6[%c0_11, %c0_12, %c0_13], %16 {strides = array<i32>} : memref<1x32x32xbf16, #tpu.memory_space<vmem>>, vector<1x32x32xbf16>,
    %17 = arith.truncf %12 : vector<32x32xf32> to vector<32x32xbf16>
    %c0_14 = arith.constant 0 : index
    %c0_15 = arith.constant 0 : index
    %c0_16 = arith.constant 0 : index
    %18 = vector.load %arg7[%c0_14, %c0_15, %c0_16] : memref<1x32x32xbf16, #tpu.memory_space<vmem>>, vector<1x32x32xbf16>
    %19 = vector.shape_cast %18 : vector<1x32x32xbf16> to vector<32x32xbf16>
    %20 = vector.shape_cast %17 : vector<32x32xbf16> to vector<1x32x32xbf16>
    tpu.vector_store %arg7[%c0_14, %c0_15, %c0_16], %20 {strides = array<i32>} : memref<1x32x32xbf16, #tpu.memory_space<vmem>>, vector<1x32x32xbf16>,
    return
  }
  func.func @transform_0(%arg0: i32) -> (i32, i32, i32) {
    %c0_i32 = arith.constant 0 : i32
    %c0_i32_0 = arith.constant 0 : i32
    %c0_i32_1 = arith.constant 0 : i32
    return %arg0, %c0_i32, %c0_i32_0 : i32, i32, i32
  }
  func.func @transform_1(%arg0: i32) -> (i32, i32) {
    %c0_i32 = arith.constant 0 : i32
    %c0_i32_0 = arith.constant 0 : i32
    %c0_i32_1 = arith.constant 0 : i32
    return %c0_i32, %c0_i32_0 : i32, i32
  }
  func.func @transform_2(%arg0: i32) -> (i32, i32) {
    %c0_i32 = arith.constant 0 : i32
    %c0_i32_0 = arith.constant 0 : i32
    %c0_i32_1 = arith.constant 0 : i32
    return %c0_i32, %c0_i32_0 : i32, i32
  }
  func.func @transform_3(%arg0: i32) -> (i32, i32) {
    %c0_i32 = arith.constant 0 : i32
    %c0_i32_0 = arith.constant 0 : i32
    %c0_i32_1 = arith.constant 0 : i32
    return %c0_i32, %c0_i32_0 : i32, i32
  }
  func.func @transform_4(%arg0: i32) -> (i32, i32) {
    %c0_i32 = arith.constant 0 : i32
    %c0_i32_0 = arith.constant 0 : i32
    %c0_i32_1 = arith.constant 0 : i32
    return %c0_i32, %c0_i32_0 : i32, i32
  }
  func.func @transform_5(%arg0: i32) -> (i32, i32, i32) {
    %c0_i32 = arith.constant 0 : i32
    %c0_i32_0 = arith.constant 0 : i32
    %c0_i32_1 = arith.constant 0 : i32
    return %arg0, %c0_i32, %c0_i32_0 : i32, i32, i32
  }
  func.func @transform_6(%arg0: i32) -> (i32, i32, i32) {
    %c0_i32 = arith.constant 0 : i32
    %c0_i32_0 = arith.constant 0 : i32
    %c0_i32_1 = arith.constant 0 : i32
    return %arg0, %c0_i32, %c0_i32_0 : i32, i32, i32
  }
}

</mosaic_0001>

<bundles_post_ra>
// kernel: tpu_custom_call.1
= control target key start
LH: loop header
LB: loop body
LE: loop exit
PB: predicated region body
PF: predicated region fallthrough
CT: control target
= control target key end

     0   :  { %12 = vsyncpa [#allocation3], 0  ;;  %s1361_s0 = inlined_call_operand.hbm [shape: f32[2,32,32], index: 0, kind: input, shape index: {}]   ;;  %s1362_s1 = inlined_call_operand.hbm [shape: bf16[32,32], index: 1, kind: input, shape index: {}]   ;;  %s1363_s2 = inlined_call_operand.vmem [shape: f32[1,32], index: 2, kind: input, shape index: {}]   ;;  %s1364_s3 = inlined_call_operand.hbm [shape: bf16[32,32], index: 3, kind: input, shape index: {}]   ;;  %s1365_s4 = inlined_call_operand.vmem [shape: f32[1,32], index: 4, kind: input, shape index: {}]   ;;  %s1366_s5 = inlined_call_operand.hbm [shape: bf16[2,32,32], index: 5, kind: output, shape index: {0}]   ;;  %s1367_s6 = inlined_call_operand.hbm [shape: bf16[2,32,32], index: 6, kind: output, shape index: {1}]  }
   0x1   :  { %14 = vsyncpa [#allocation3 + $0x1], 0 }
   0x2   :  { %15 = vsyncpa [#allocation6], 0 }
   0x3   :  { %16 = vsyncpa [#allocation4], 0 }
   0x4   :  { %18 = vsyncpa [#allocation4 + $0x1], 0 }
   0x5   :  { %19 = vsyncpa [#allocation10], 0 }
   0x6   :  { %21 = vsyncpa [#allocation10 + $0x1], 0  ;;  %s1061_s21 = smov 0   ;;  %s1063_s22 = smov 0  }
   0x7   :  { %s1065_s23 = smov 0   ;;  %s1067_s24 = smov 0  }
   0x8 LB: > { %s1082_s25 = sadd.s32 4294967295, %s1013_s24   ;;  %s668_s26 = sadd.s32 4294967294, %s1013_s24   ;;  %s1013_s24 = sphi %s1067_s24, %s1387_s24   ;;  %s1009_s23 = sphi %s1065_s23, %s1386_s23   ;;  %s1005_s22 = sphi %s1063_s22, %s1385_s22   ;;  %s1001_s21 = sphi %s1061_s21, %s1384_s21  }
   0x9   : > { %p47_p0 = scmp.ne.s32.totalorder %s1005_s22, %s1001_s21  ;;  %p1368_p1 = scmp.eq.s32.totalorder %s1082_s25, 0 }
   0xa   : > { %p161_p3 = scmp.eq.s32.totalorder %s668_s26, 1  ;;  %p669_p5 = scmp.ge.s32.totalorder %s1013_s24, 1 }
   0xb   : > { %p1091_p4 = por %p1368_p1, %p47_p0  ;;  %p194_p7 = scmp.lt.s32.totalorder %s1013_s24, 3 }
   0xc   : > { %p1096_p6 = por %p161_p3, %p47_p0  ;;  %s1015_s30 = smov [#allocation5]  }
   0xd   : > { %s1371_s27 = scalar_select %p1091_p4, 1, 0 }
   0xe   : > { %s1372_s28 = scalar_select %p1096_p6, 1, 0 }
   0xf   : > { %p1101_p8 = pnand %p669_p5, %p194_p7  ;;  %s206_s7 = sshll.u32 %s1015_s30, 4  ;;  %s1105_s7 = int_to_ptr.vmem [resolvable:$true] %s206_s7 }
  0x10   : > { %s1016_s9 = smov [#allocation7]   ;;  %s825_s13 = scalar_lea.hbm %s1362_s1, 256 }
  0x11   : > { %p757_p9 = pneg %p1101_p8  ;;  %s222_s10 = sshll.u32 %s1016_s9, 4  ;;  %s1116_s10 = int_to_ptr.vmem [resolvable:$true] %s222_s10 }
  0x12   : > { %p826_p12 = scmp.ne.s32.totalorder %s1362_s1, %s825_s13  ;;  %p832_p5 = scmp.lt.u32.totalorder %s825_s13, %s1362_s1 }
  0x13   : > { %p1112_p11 = pnand %p757_p9, %p1368_p1 }
  0x15   : > { %p827_p13 = pneg %p1112_p11 }
  0x17   : > { %p828_p0 = pnand %p827_p13, %p826_p12 }
  0x19   : > { %p829_p3 = pneg %p828_p0 }
  0x1b   : > { %p834_p7 = pnand %p832_p5, %p829_p3 }
  0x1d   : > { %837 = shalt.err (!%p834_p7)
}
  0x1e   : > { %s838_s18 = scalar_lea.vmem %s1105_s7, 256  ;;  %p846_p2 = scmp.lt.s32.totalorder %s1105_s7, %s1105_s7 }
  0x1f   : > { %p839_p9 = scmp.ne.s32.totalorder %s1105_s7, %s838_s18  ;;  %p847_p12 = scmp.lt.s32.totalorder %s838_s18, %s838_s18 }
  0x21   : > { %p841_p10 = pnand %p839_p9, %p827_p13  ;;  %p848_p0 = por %p847_p12, %p846_p2 }
  0x23   : > { %p842_p1 = pneg %p841_p10 }
  0x25   : > { %p849_p6 = pnand %p848_p0, %p842_p1 }
  0x27   : > { %852 = shalt.err (!%p849_p6)
}
  0x28   : > { %s1017_s19 = smov 64   ;;  %s1018_s20 = smov 4  }
  0x29   : > { %760 = dma.hbm_to_vmem [thread:$0]  (!%p1112_p11), %s1362_s1, 256, %s1105_s7, [#allocation6], %s1017_s19, %s1017_s19, %s1018_s20  }
  0x2a   : > { %s853_s12 = scalar_lea.hbm %s1364_s3, 256 }
  0x2b   : > { %p854_p2 = scmp.ne.s32.totalorder %s1364_s3, %s853_s12  ;;  %p860_p10 = scmp.lt.u32.totalorder %s853_s12, %s1364_s3 }
  0x2d   : > { %p856_p1 = pnand %p854_p2, %p827_p13 }
  0x2f   : > { %p857_p6 = pneg %p856_p1 }
  0x31   : > { %p862_p3 = pnand %p860_p10, %p857_p6 }
  0x33   : > { %865 = shalt.err (!%p862_p3)
}
  0x34   : > { %s866_s7 = scalar_lea.vmem %s1116_s10, 256  ;;  %p874_p12 = scmp.lt.s32.totalorder %s1116_s10, %s1116_s10 }
  0x35   : > { %p867_p5 = scmp.ne.s32.totalorder %s1116_s10, %s866_s7  ;;  %p875_p0 = scmp.lt.s32.totalorder %s866_s7, %s866_s7 }
  0x37   : > { %p869_p7 = pnand %p867_p5, %p827_p13  ;;  %p876_p2 = por %p875_p0, %p874_p12 }
  0x39   : > { %p870_p9 = pneg %p869_p7 }
  0x3b   : > { %p877_p1 = pnand %p876_p2, %p870_p9 }
  0x3d   : > { %880 = shalt.err (!%p877_p1)
}
  0x3e   : > { %763 = dma.hbm_to_vmem [thread:$0]  (!%p1112_p11), %s1364_s3, 256, %s1116_s10, [#allocation6], %s1017_s19, %s1017_s19, %s1018_s20  }
  0x3f   : > { %s1171_s26 = sadd.s32 1, %s1013_s24   ;;  %s34_s8 = sadd.s32 1, %s1009_s23 }
  0x40   : > { %s31_s30 = ssub.s32 %s1013_s24, %s1171_s26  ;;  %p41_p13 = scmp.ne.s32.totalorder %s1009_s23, %s1005_s22 }
  0x41   : > { %p32_p6 = scmp.eq.s32.totalorder %s31_s30, 0  ;;  %p42_p10 = scmp.eq.s32.totalorder %s1013_s24, 0 }
  0x42   : > { %p1375_p3 = scmp.eq.s32.totalorder %s1082_s25, 1  ;;  %p777_p7 = scmp.lt.s32.totalorder %s1013_s24, 2 }
  0x43   : > { %s1187_s11 = scalar_select %p32_p6, %s1009_s23, %s34_s8  }
  0x44   : > { %p1181_p5 = por %p1375_p3, %p41_p13  ;;  %p43_p9 = por %p42_p10, %p41_p13 }
  0x45   : > { %s239_s12 = sand.u32 1, %s1009_s23   ;;  %s708_s10 = sshll.u32 %s1013_s24, 9 }
  0x46   : > { %s1376_s9 = scalar_select %p1181_p5, 1, 0 }
  0x47   : > { %s673_s13 = sshll.u32 %s239_s12, 5  ;;  %s1194_s14 = scalar_lea.hbm %s1361_s0, %s708_s10 }
  0x48   : > { %s243_s15 = scalar_lea.vmem [#allocation2], %s673_s13  ;;  %p1198_p11 = pnand %p777_p7, %p43_p9 }
  0x49   : > { %s250_s16 = sshll.u32 %s243_s15, 4  ;;  %s1202_s17 = scalar_lea.sflag [#allocation3], %s239_s12  ;;  %s1196_s16 = int_to_ptr.vmem [resolvable:$true] %s250_s16 }
  0x4a   : > { %s881_s18 = scalar_lea.hbm %s1194_s14, 512  ;;  %p883_p0 = pneg %p1198_p11 }
  0x4b   : > { %p882_p12 = scmp.ne.s32.totalorder %s1194_s14, %s881_s18  ;;  %s886_s13 = scalar_lea.hbm %s1361_s0, 1024 }
  0x4c   : > { %p887_p13 = scmp.lt.u32.totalorder %s1194_s14, %s1361_s0  ;;  %p888_p6 = scmp.lt.u32.totalorder %s886_s13, %s881_s18 }
  0x4d   : > { %p884_p2 = pnand %p883_p0, %p882_p12  ;;  %p890_p3 = scmp.lt.u32.totalorder %s881_s18, %s1194_s14 }
  0x4e   : > { %p889_p10 = por %p888_p6, %p887_p13 }
  0x4f   : > { %p885_p1 = pneg %p884_p2 }
  0x50   : > { %p891_p7 = por %p890_p3, %p889_p10 }
  0x52   : > { %p892_p9 = pnand %p891_p7, %p885_p1 }
  0x54   : > { %895 = shalt.err (!%p892_p9)
}
  0x55   : > { %s896_s12 = scalar_lea.vmem %s1196_s16, 512  ;;  %s1019_s20 = smov [#allocation2]  }
  0x56   : > { %p897_p12 = scmp.ne.s32.totalorder %s1196_s16, %s896_s12  ;;  %s901_s15 = sshll.u32 %s1019_s20, 4  ;;  %s902_s15 = int_to_ptr.vmem [resolvable:$false] %s901_s15 }
  0x57   : > { %s903_s8 = scalar_lea.vmem %s902_s15, 1024  ;;  %p904_p4 = scmp.lt.s32.totalorder %s1196_s16, %s902_s15 }
  0x58   : > { %p899_p2 = pnand %p897_p12, %p883_p0  ;;  %p905_p13 = scmp.lt.s32.totalorder %s903_s8, %s896_s12 }
  0x5a   : > { %p900_p5 = pneg %p899_p2  ;;  %p906_p6 = por %p905_p13, %p904_p4 }
  0x5c   : > { %p907_p10 = pnand %p906_p6, %p900_p5 }
  0x5e   : > { %910 = shalt.err (!%p907_p10)
}
  0x5f   : > { %s1020_s18 = smov 128   ;;  %s1021_s30 = smov 8  }
  0x60   : > { %767 = dma.hbm_to_vmem [thread:$0]  (!%p1198_p11), %s1194_s14, 512, %s1196_s16, %s1202_s17, %s1020_s18, %s1020_s18, %s1021_s30  }
  0x61   : > { %262 = sbr.rel (%p1101_p8) target bundleno = 374 (0x176), region = 40  ;;  %s1233_s13 = sand.u32 (!%p1101_p8), 1, %s1005_s22  }
  0x62   : > { %s677_s10 = sshll.u32 (!%p1101_p8), %s1233_s13, 5  ;;  %s265_s19 = scalar_lea.sflag (!%p1101_p8), [#allocation3], %s1233_s13 }
  0x63   : > { %s268_s12 = scalar_lea.vmem (!%p1101_p8), [#allocation2], %s677_s10  ;;  %p1378_p4 = scmp.ne.s32.totalorder (!%p1101_p8), %s1371_s27, 0 }
  0x68   : > { %984 = dma.done.wait (%p1378_p4), %s265_s19, 512  }
  0x69   : > { %986 = vsyncadd (%p1378_p4), %s265_s19, 4294966784  ;;  %p1379_p5 = scmp.eq.s32.totalorder %s1082_s25, 0 }
  0x6b   : > { %988 = dma.done.wait (%p1379_p5), [#allocation6], 512   ;;  %p1380_p11 = pmov %p1379_p5 }
  0x6c   : > { %v821_v0 = vld [vmem:[#allocation5] sm:$0xff]   ;;  %v822_v1 = vld [vmem:[#allocation7] sm:$0xff]   ;;  %v823_v2 = vld [vmem:[#allocation5 + $0x8] sm:$0xff]   ;;  %vm340_vm0 = vcmask 261120   ;;  %s680_s27 = sshll.u32 %s1233_s13, 4  ;;  %vm484_vm1 = vcmask 257024  }
  0x6d   : > { %990 = vsyncadd (%p1380_p11), [#allocation6], 4294966784  ;;  %727 = vmatprep.subr.bf16.mxu0 %v821_v0  ;;  %735 = vmatprep.subr.bf16.mxu1 %v822_v1  ;;  %v824_v3 = vld [vmem:[#allocation7 + $0x8] sm:$0xff]   ;;  %v311_v4 = vld [vmem:[%s268_s12] sm:$0xff]  ;;  %s1252_s17 = scalar_lea.vmem [#allocation8], %s680_s27  ;;  %s1255_s15 = scalar_lea.vmem [#allocation9], %s680_s27 }
  0x6e   : > { %728 = vmatpush3.bf16.msra.mxu0 %v821_v0  ;;  %736 = vmatpush3.bf16.msra.mxu1 %v822_v1  ;;  %v312_v5 = vld [vmem:[%s268_s12 + $0x8] sm:$0xff]  ;;  %v313_v6 = vld [vmem:[%s268_s12 + $0x10] sm:$0xff]  ;;  %v314_v8 = vld [vmem:[%s268_s12 + $0x18] sm:$0xff]  ;;  %s528_s20 = sshll.u32 %s1252_s17, 4  ;;  %s544_s8 = sshll.u32 %s1255_s15, 4  ;;  %s1259_s20 = int_to_ptr.vmem [resolvable:$true] %s528_s20  ;;  %s1261_s8 = int_to_ptr.vmem [resolvable:$true] %s544_s8 }
  0x6f   : > { %729 = vmatprep.subr.bf16.mxu0 %v823_v2  ;;  %737 = vmatprep.subr.bf16.mxu1 %v824_v3  ;;  %v315_v7 = vpack.c.bf16 %v312_v5, %v311_v4  ;;  %v316_v9 = vpack.c.bf16 %v314_v8, %v313_v6  ;;  %v682_v10 = vld [vmem:[%s1363_s2] ss:$0 sm:$0xff]  ;;  %s717_s18 = sshll.u32 %s1082_s25, 8  ;;  %s510_s29 = scalar_lea.sflag [#allocation4], %s1233_s13 }
  0x70   : > { %v687_v11 = vld [vmem:[%s1365_s4] ss:$0 sm:$0xff]  ;;  %s1268_s10 = scalar_lea.hbm %s1366_s5, %s717_s18  ;;  %s1281_s27 = scalar_lea.hbm %s1367_s6, %s717_s18 }
  0x71   : > { %731 = vmatprep.mubr.msk.bf16.mxu0 %vm340_vm0, %v315_v7  ;;  %739 = vmatprep.mubr.msk.bf16.mxu1 %vm340_vm0, %v315_v7  ;;  %s911_s14 = scalar_lea.vmem %s1259_s20, 256  ;;  %p1381_p0 = scmp.ne.s32.totalorder %s1376_s9, 0 }
  0x72   : > { %730 = vmatpush3.bf16.msra.mxu0 %v823_v2  ;;  %738 = vmatpush3.bf16.msra.mxu1 %v824_v3  ;;  %p912_p8 = scmp.ne.s32.totalorder %s1259_s20, %s911_s14  ;;  %s1022_s16 = smov [#allocation8]  }
  0x73   : > { %s915_s7 = sshll.u32 %s1022_s16, 4  ;;  %s916_s7 = int_to_ptr.vmem [resolvable:$false] %s915_s7 }
  0x74   : > { %p913_p1 = pnand %p912_p8, %p1381_p0  ;;  %s917_s25 = scalar_lea.vmem %s916_s7, 512 }
  0x75   : > { %732 = vmatmul.mubr.msk.bf16.vlgmr.msra.gmra.mrb[0].mxu0 %vm340_vm0, %v316_v9  ;;  %740 = vmatmul.mubr.msk.bf16.vlgmr.msra.gmra.mrb[0].mxu1 %vm340_vm0, %v316_v9  ;;  %p918_p7 = scmp.lt.s32.totalorder %s1259_s20, %s916_s7  ;;  %p919_p9 = scmp.lt.s32.totalorder %s917_s25, %s911_s14 }
  0x76   : > { %p914_p3 = pneg %p913_p1 }
  0x77   : > { %p920_p12 = por %p919_p9, %p918_p7 }
  0x79   : > { %p921_p2 = pnand %p920_p12, %p914_p3 }
 0x148   : > { %v733_v12 = vpop.f32.mrb[0].mxu0  ;;  %v741_v14 = vpop.f32.mrb[0].mxu1 }
 0x149   : > { %v390_v13 = vadd.f32 %v733_v12, %v682_v10  ;;  %v381_v15 = vpop.f32.mrb[1].mxu0  ;;  %v462_v16 = vadd.f32 %v741_v14, %v687_v11  ;;  %v453_v18 = vpop.f32.mrb[1].mxu1 }
 0x14a   : > { %v382_v17 = vadd.f32 %v682_v10, %v381_v15  ;;  %v734_v19 = vpop.f32.mrb[2].mxu0  ;;  %v454_v21 = vadd.f32 %v687_v11, %v453_v18  ;;  %v742_v23 = vpop.f32.mrb[2].mxu1 }
 0x14b   : > { %v711_v20 = vpack.c.bf16 %v390_v13, %v390_v13  ;;  %v393_v22 = vadd.f32 %v734_v19, %v682_v10  ;;  %v384_v24 = vpop.f32.mrb[3].mxu0  ;;  %v715_v25 = vpack.c.bf16 %v462_v16, %v462_v16  ;;  %v465_v27 = vadd.f32 %v742_v23, %v687_v11  ;;  %v456_v29 = vpop.f32.mrb[3].mxu1 }
 0x14c   : > { %v709_v26 = vpack.c.bf16 %v382_v17, %v382_v17  ;;  %v385_v28 = vadd.f32 %v682_v10, %v384_v24  ;;  %v713_v30 = vpack.c.bf16 %v454_v21, %v454_v21  ;;  %v457_v32 = vadd.f32 %v687_v11, %v456_v29 }
 0x14d   : > { %487 = vst.msk [vmem:[%s1252_s17 + $0x8] sm:$0xf] %vm484_vm1, %v711_v20  ;;  %v712_v31 = vpack.c.bf16 %v393_v22, %v393_v22  ;;  %507 = vst.msk [vmem:[%s1255_s15 + $0x8] sm:$0xf] %vm484_vm1, %v715_v25  ;;  %v716_v33 = vpack.c.bf16 %v465_v27, %v465_v27 }
 0x14e   : > { %485 = vst.msk [vmem:[%s1252_s17] sm:$0xf] %vm484_vm1, %v709_v26  ;;  %v710_v34 = vpack.c.bf16 %v385_v28, %v385_v28  ;;  %505 = vst.msk [vmem:[%s1255_s15] sm:$0xf] %vm484_vm1, %v713_v30  ;;  %v714_v35 = vpack.c.bf16 %v457_v32, %v457_v32 }
 0x14f   : > { %488 = vst.msk [vmem:[%s1252_s17 + $0xc] sm:$0xf] %vm484_vm1, %v712_v31  ;;  %508 = vst.msk [vmem:[%s1255_s15 + $0xc] sm:$0xf] %vm484_vm1, %v716_v33 }
 0x150   : > { %486 = vst.msk [vmem:[%s1252_s17 + $0x4] sm:$0xf] %vm484_vm1, %v710_v34  ;;  %506 = vst.msk [vmem:[%s1255_s15 + $0x4] sm:$0xf] %vm484_vm1, %v714_v35 }
 0x151   : > { %924 = shalt.err (!%p921_p2)
}
 0x152   : > { %s925_s17 = scalar_lea.hbm %s1268_s10, 256  ;;  %s929_s30 = scalar_lea.hbm %s1366_s5, 512 }
 0x153   : > { %p926_p13 = scmp.ne.s32.totalorder %s1268_s10, %s925_s17  ;;  %p930_p4 = scmp.lt.u32.totalorder %s1268_s10, %s1366_s5 }
 0x154   : > { %p931_p5 = scmp.lt.u32.totalorder %s929_s30, %s925_s17  ;;  %p933_p8 = scmp.lt.u32.totalorder %s925_s17, %s1268_s10 }
 0x155   : > { %p927_p6 = pnand %p926_p13, %p1381_p0 }
 0x156   : > { %p932_p11 = por %p931_p5, %p930_p4 }
 0x157   : > { %p928_p10 = pneg %p927_p6 }
 0x158   : > { %p934_p1 = por %p933_p8, %p932_p11 }
 0x15a   : > { %p935_p3 = pnand %p934_p1, %p928_p10 }
 0x15c   : > { %938 = shalt.err (!%p935_p3)
}
 0x15d   : > { %s1023_s14 = smov 64   ;;  %s1024_s16 = smov 4  }
 0x15e   : > { %753 = dma.vmem_to_hbm [thread:$0]  (%p1381_p0), %s1259_s20, 256, %s1268_s10, %s510_s29, %s1023_s14, %s1023_s14, %s1024_s16  }
 0x15f   : > { %s515_s7 = scalar_lea.sflag [#allocation10], %s1233_s13  ;;  %s939_s25 = scalar_lea.vmem %s1261_s8, 256 }
 0x160   : > { %p940_p7 = scmp.ne.s32.totalorder %s1261_s8, %s939_s25  ;;  %s1025_s17 = smov [#allocation9]  }
 0x161   : > { %s943_s15 = sshll.u32 %s1025_s17, 4  ;;  %s944_s15 = int_to_ptr.vmem [resolvable:$false] %s943_s15 }
 0x162   : > { %p941_p9 = pnand %p940_p7, %p1381_p0  ;;  %s945_s18 = scalar_lea.vmem %s944_s15, 512 }
 0x163   : > { %p946_p2 = scmp.lt.s32.totalorder %s1261_s8, %s944_s15  ;;  %p947_p13 = scmp.lt.s32.totalorder %s945_s18, %s939_s25 }
 0x164   : > { %p942_p12 = pneg %p941_p9 }
 0x165   : > { %p948_p6 = por %p947_p13, %p946_p2 }
 0x167   : > { %p949_p10 = pnand %p948_p6, %p942_p12 }
 0x169   : > { %952 = shalt.err (!%p949_p10)
}
 0x16a   : > { %s953_s20 = scalar_lea.hbm %s1281_s27, 256  ;;  %s957_s30 = scalar_lea.hbm %s1367_s6, 512 }
 0x16b   : > { %p954_p4 = scmp.ne.s32.totalorder %s1281_s27, %s953_s20  ;;  %p958_p8 = scmp.lt.u32.totalorder %s1281_s27, %s1367_s6 }
 0x16c   : > { %p959_p1 = scmp.lt.u32.totalorder %s957_s30, %s953_s20  ;;  %p961_p7 = scmp.lt.u32.totalorder %s953_s20, %s1281_s27 }
 0x16d   : > { %p955_p5 = pnand %p954_p4, %p1381_p0 }
 0x16e   : > { %p960_p3 = por %p959_p1, %p958_p8 }
 0x16f   : > { %p956_p11 = pneg %p955_p5 }
 0x170   : > { %p962_p9 = por %p961_p7, %p960_p3 }
 0x172   : > { %p963_p12 = pnand %p962_p9, %p956_p11 }
 0x174   : > { %966 = shalt.err (!%p963_p12)
}
 0x175   : > { %754 = dma.vmem_to_hbm [thread:$0]  (%p1381_p0), %s1261_s8, 256, %s1281_s27, %s515_s7, %s1023_s14, %s1023_s14, %s1024_s16  }
 0x176 PF: > { %s559_s25 = sand.u32 1, %s1001_s21   ;;  %p1382_p2 = scmp.ne.s32.totalorder %s1372_s28, 0 }
 0x177   : > { %p1383_p13 = scmp.ge.s32.totalorder %s1013_s24, 2  ;;  %s560_s17 = scalar_lea.sflag [#allocation4], %s559_s25 }
 0x179   : > { %p769_p6 = pnand %p1383_p13, %p1382_p2 }
 0x17b   : > { %992 = dma.done.wait (!%p769_p6), %s560_s17, 256  }
 0x17c   : > { %994 = vsyncadd (!%p769_p6), %s560_s17, 4294967040  ;;  %s569_s9 = scalar_lea.sflag [#allocation10], %s559_s25 }
 0x17d   : > { %996 = dma.done.wait (!%p769_p6), %s569_s9, 256  }
 0x17e   : > { %998 = vsyncadd (!%p769_p6), %s569_s9, 4294967040  ;;  %p24_p0 = scmp.ge.s32.totalorder %s1171_s26, 4   ;;  %s1384_s21 = smov %s1005_s22 }
 0x17f   : > { %s1385_s22 = smov %s1009_s23  ;;  %s1386_s23 = smov %s1187_s11 }
 0x180   : > { %s1387_s24 = smov %s1171_s26  ;;  %26 = sbr.rel (!%p24_p0) target bundleno = 8 (0x8), region = 110 }
 0x187   :  { %574 = vsyncpa [#allocation3], 1 }
 0x188   :  { %576 = vsyncpa [#allocation3 + $0x1], 1 }
 0x189   :  { %577 = vsyncpa [#allocation6], 1 }
 0x18a   :  { %578 = vsyncpa [#allocation4], 1 }
 0x18b   :  { %580 = vsyncpa [#allocation4 + $0x1], 1 }
 0x18c   :  { %581 = vsyncpa [#allocation10], 1 }
 0x18d   :  { %583 = vsyncpa [#allocation10 + $0x1], 1 }

</bundles_post_ra>
